<compile_context>
chip_gen: v7x
topology: tpu7x:2x2x1
jax: 0.10.0
libtpu: 0.0.40
codegen_flags: <defaults>
</compile_context>

<pallas_src>
import numpy as np
import jax
import jax.numpy as jnp
from jax.experimental import pallas as pl
from jax.experimental.pallas import tpu as pltpu

# ----------------------- model dims (small, synthetic) -----------------------
B = 2          # batch
N = 8          # number of boxes / sequence length
D_MODEL = 32   # size
N_HEADS = 4
D_K = D_MODEL // N_HEADS
D_FF = 64
DIM_G = 64     # trignometric geometry embedding dim
EPS_LN = 1e-6


# ------------------------------ Pallas kernel --------------------------------
def box_encoder_layer_kernel(
    x_ref, bias_ref,
    ln1g_ref, ln1b_ref,
    wqkv_ref, bqkv_ref, wo_ref, bo_ref,
    ln2g_ref, ln2b_ref,
    w1_ref, b1_ref, w2_ref, b2_ref,
    out_ref,
    head_scratch,
):
    x = x_ref[...]                       # (B*N, D) — all batch rows at once
    bn, d = x.shape

    def layer_norm(v, g, b):
        mean = jnp.mean(v, axis=-1, keepdims=True)
        # torch.Tensor.std is unbiased (divide by D-1) -> replicate exactly.
        var = jnp.sum((v - mean) ** 2, axis=-1, keepdims=True) / (d - 1)
        return g * (v - mean) / (jnp.sqrt(var) + EPS_LN) + b

    # ---- sublayer[0]: x + BoxMHA(box, box, LN1(x), LN1(x), LN1(x), mask) ----
    xn = layer_norm(x, ln1g_ref[0], ln1b_ref[0])

    # fused QKV projection: one (BN, D) @ (D, 3D) matmul
    qkv = jnp.dot(xn, wqkv_ref[...], preferred_element_type=jnp.float32) + bqkv_ref[0]
    scale = 1.0 / jnp.sqrt(jnp.float32(D_K))
    q = qkv[:, :D_MODEL] * scale          # fold 1/sqrt(d_k) into Q once
    k = qkv[:, D_MODEL:2 * D_MODEL]
    v = qkv[:, 2 * D_MODEL:]

    # per-head scaled QK^T scores over the block-diagonal (batch-folded) rows
    scores = []
    for hh in range(N_HEADS):             # static unroll over heads (tiny matmuls)
        sl = slice(hh * D_K, (hh + 1) * D_K)
        scores.append(jax.lax.dot_general(
            q[:, sl], k[:, sl], (((1,), (1,)), ((), ())),
            preferred_element_type=jnp.float32))       # (BN, BN)

    # bias_ref already holds log(clamp(relu(WG·emb),1e-6)) + key-mask bias +
    # cross-batch block mask, stacked per head -> add once, softmax once.
    logits = jnp.concatenate(scores, axis=0) + bias_ref[...]     # (H*BN, BN)
    m = jnp.max(logits, axis=-1, keepdims=True)
    e = jnp.exp(logits - m)
    p = e * pl.reciprocal(jnp.sum(e, axis=-1, keepdims=True), approx=True)

    # P @ V per head into a VMEM slab, then ONE output projection.
    for hh in range(N_HEADS):
        sl = slice(hh * D_K, (hh + 1) * D_K)
        ph = p[hh * bn:(hh + 1) * bn]                            # (BN, BN)
        head_scratch[:, sl] = jnp.dot(ph, v[:, sl],
                                      preferred_element_type=jnp.float32)
    mha = jnp.dot(head_scratch[...], wo_ref[...],
                  preferred_element_type=jnp.float32) + bo_ref[0]
    x1 = x + mha                          # residual (dropout identity in eval)

    # ---- sublayer[-1]: x1 + FFN(LN2(x1)) ----
    xn2 = layer_norm(x1, ln2g_ref[0], ln2b_ref[0])
    h1 = jnp.maximum(
        jnp.dot(xn2, w1_ref[...], preferred_element_type=jnp.float32) + b1_ref[0], 0.0)
    ff = jnp.dot(h1, w2_ref[...], preferred_element_type=jnp.float32) + b2_ref[0]
    out_ref[...] = (x1 + ff).astype(out_ref.dtype)


def _full_spec(shape):
    return pl.BlockSpec(shape, lambda i, _nd=len(shape): (0,) * _nd)


def _build_attention_bias(wg, mask):
    """Precompute the full additive attention bias in JAX glue.

    wg:   (B, H, N, N)  relu'd geometry weights
    mask: (B, 1, N)     1 = keep
    returns (H*B*N, B*N) block-diagonal bias:
      diag blocks  = log(clamp(wg, 1e-6)) + (mask==0)*(-1e9)
      off-diag     = -1e9  (so batch-folded rows never attend across batches)
    """
    Bb, Hh, Nn, _ = wg.shape
    logb = jnp.log(jnp.maximum(wg, 1e-6))                               # (B,H,N,N)
    mbias = jnp.where(mask[:, :, None, :] == 0.0, -1e9, 0.0)            # (B,1,1,N)
    small = logb + mbias                                                 # (B,H,N,N)
    full = jnp.full((Hh, Bb * Nn, Bb * Nn), -1e9, jnp.float32)
    for b in range(Bb):
        full = full.at[:, b * Nn:(b + 1) * Nn, b * Nn:(b + 1) * Nn].set(small[b])
    return full.reshape(Hh * Bb * Nn, Bb * Nn)


def box_encoder_layer(x, wg, mask, params):
    Bb, Nn, Dd = x.shape
    BN = Bb * Nn

    # wrapper-side fusions (free XLA ops, executed once)
    bias = _build_attention_bias(wg, mask)                              # (H*BN, BN)
    wqkv = jnp.concatenate([params["wq"], params["wk"], params["wv"]], axis=1)  # (D, 3D)
    bqkv = jnp.concatenate([params["bq"], params["bk"], params["bv"]], axis=1)  # (1, 3D)
    x2d = x.reshape(BN, Dd)

    param_list = [
        params["ln1_g"], params["ln1_b"],
        wqkv, bqkv, params["wo"], params["bo"],
        params["ln2_g"], params["ln2_b"],
        params["w1"], params["b1"], params["w2"], params["b2"],
    ]
    in_specs = [_full_spec(x2d.shape), _full_spec(bias.shape)] + \
               [_full_spec(p.shape) for p in param_list]

    out2d = pl.pallas_call(
        box_encoder_layer_kernel,
        out_shape=jax.ShapeDtypeStruct((BN, Dd), jnp.float32),
        grid=(1,),                       # single invocation: batch folded into rows
        in_specs=in_specs,
        out_specs=_full_spec((BN, Dd)),
        scratch_shapes=[pltpu.VMEM((BN, Dd), jnp.float32)],
        compiler_params=pltpu.CompilerParams(dimension_semantics=("arbitrary",)),
    )(x2d, bias, *param_list)
    return out2d.reshape(Bb, Nn, Dd)


# ---------------------- JAX glue: box geometry features ----------------------
def box_relational_embedding(boxes, dim_g=DIM_G, wave_len=1000.0):
    """Trignometric relative-geometry embedding, (B, N, N, dim_g)."""
    x_min, y_min, x_max, y_max = [boxes[..., i:i + 1] for i in range(4)]  # (B,N,1)
    cx = (x_min + x_max) * 0.5
    cy = (y_min + y_max) * 0.5
    w = x_max - x_min + 1.0
    h = y_max - y_min + 1.0
    delta_x = jnp.log(jnp.maximum(jnp.abs((cx - jnp.swapaxes(cx, 1, 2)) / w), 1e-3))
    delta_y = jnp.log(jnp.maximum(jnp.abs((cy - jnp.swapaxes(cy, 1, 2)) / h), 1e-3))
    delta_w = jnp.log(w / jnp.swapaxes(w, 1, 2))
    delta_h = jnp.log(h / jnp.swapaxes(h, 1, 2))
    position_mat = jnp.stack([delta_x, delta_y, delta_w, delta_h], axis=-1)   # (B,N,N,4)
    feat_range = jnp.arange(dim_g // 8, dtype=jnp.float32)
    dim_mat = 1.0 / (wave_len ** (feat_range / (dim_g / 8.0)))                # (8,)
    mul_mat = (position_mat[..., None] * 100.0) * dim_mat                     # (B,N,N,4,8)
    mul_mat = mul_mat.reshape(position_mat.shape[:3] + (-1,))                 # (B,N,N,32)
    return jnp.concatenate([jnp.sin(mul_mat), jnp.cos(mul_mat)], axis=-1)     # (B,N,N,64)


def geometry_weights(boxes, wg_w, wg_b):
    """relu(WG_h(geo_emb)) per head -> (B, H, N, N). Tiny linear, kept as JAX glue."""
    emb = box_relational_embedding(boxes)                                     # (B,N,N,64)
    wgt = jnp.einsum("bqkg,gh->bhqk", emb, wg_w) + wg_b[None, :, None, None]
    return jnp.maximum(wgt, 0.0)


# ------------------------------ pure-JAX reference ----------------------------
def reference(x, wg, mask, p):
    def layer_norm(v, g, b):
        mean = v.mean(-1, keepdims=True)
        var = ((v - mean) ** 2).sum(-1, keepdims=True) / (v.shape[-1] - 1)
        return g * (v - mean) / (jnp.sqrt(var) + EPS_LN) + b

    Bb, Nn, Dd = x.shape
    xn = layer_norm(x, p["ln1_g"][0], p["ln1_b"][0])
    q = xn @ p["wq"] + p["bq"][0]
    k = xn @ p["wk"] + p["bk"][0]
    v = xn @ p["wv"] + p["bv"][0]
    heads = lambda t: t.reshape(Bb, Nn, N_HEADS, D_K).transpose(0, 2, 1, 3)
    qh, kh, vh = heads(q), heads(k), heads(v)
    scores = jnp.einsum("bhqd,bhkd->bhqk", qh, kh) / jnp.sqrt(jnp.float32(D_K))
    logits = jnp.log(jnp.maximum(wg, 1e-6)) + scores
    logits = jnp.where(mask[:, :, None, :] == 0.0, -1e9, logits)
    attn = jax.nn.softmax(logits, axis=-1)
    o = jnp.einsum("bhqk,bhkd->bhqd", attn, vh).transpose(0, 2, 1, 3).reshape(Bb, Nn, Dd)
    x1 = x + (o @ p["wo"] + p["bo"][0])
    xn2 = layer_norm(x1, p["ln2_g"][0], p["ln2_b"][0])
    ff = jnp.maximum(xn2 @ p["w1"] + p["b1"][0], 0.0) @ p["w2"] + p["b2"][0]
    return x1 + ff


# ----------------------------------- main -------------------------------------
if __name__ == "__main__":
    key = jax.random.PRNGKey(0)
    ks = jax.random.split(key, 20)
    init = lambda k, shape, s=0.1: (s * jax.random.normal(k, shape)).astype(jnp.float32)

    params = {
        "ln1_g": jnp.ones((1, D_MODEL), jnp.float32),
        "ln1_b": jnp.zeros((1, D_MODEL), jnp.float32),
        "wq": init(ks[0], (D_MODEL, D_MODEL)), "bq": init(ks[1], (1, D_MODEL)),
        "wk": init(ks[2], (D_MODEL, D_MODEL)), "bk": init(ks[3], (1, D_MODEL)),
        "wv": init(ks[4], (D_MODEL, D_MODEL)), "bv": init(ks[5], (1, D_MODEL)),
        "wo": init(ks[6], (D_MODEL, D_MODEL)), "bo": init(ks[7], (1, D_MODEL)),
        "ln2_g": jnp.ones((1, D_MODEL), jnp.float32),
        "ln2_b": jnp.zeros((1, D_MODEL), jnp.float32),
        "w1": init(ks[8], (D_MODEL, D_FF)), "b1": init(ks[9], (1, D_FF)),
        "w2": init(ks[10], (D_FF, D_MODEL)), "b2": init(ks[11], (1, D_MODEL)),
    }
    wg_w = init(ks[12], (DIM_G, N_HEADS))   # WGs: per-head Linear(dim_g, 1) stacked
    wg_b = init(ks[13], (N_HEADS,))

    # inputs
    x = jax.random.normal(ks[14], (B, N, D_MODEL), jnp.float32)
    tl = jax.random.uniform(ks[15], (B, N, 2), jnp.float32) * 10.0
    wh = jax.random.uniform(ks[16], (B, N, 2), jnp.float32) * 5.0 + 1.0
    boxes = jnp.concatenate([tl, tl + wh], axis=-1)              # (B, N, 4)
    mask = jnp.ones((B, 1, N), jnp.float32).at[1, 0, N - 1].set(0.0)

    # JAX glue: geometry bias (elementwise + tiny 64->H linear); hot path is in the kernel.
    wg = geometry_weights(boxes, wg_w, wg_b)                     # (B, H, N, N)

    # TODO(synk): dropout inside SublayerConnection / attention is identity (eval mode).
    out = box_encoder_layer(x, wg, mask, params)
    out = jax.block_until_ready(out)

    with jax.default_matmul_precision("float32"):
        ref = jax.block_until_ready(reference(x, wg, mask, params))

    assert out.shape == (B, N, D_MODEL)
    np.testing.assert_allclose(np.asarray(out), np.asarray(ref), rtol=1e-2, atol=1e-2)
    print("KERNEL_OK")
</pallas_src>

<mosaic_0001>
module attributes {stable_mosaic.version = 11 : i64} {
  func.func @box_encoder_layer_kernel(%arg0: i32, %arg1: memref<16x32xf32, #tpu.memory_space<vmem>>, %arg2: memref<64x16xf32, #tpu.memory_space<vmem>>, %arg3: memref<1x32xf32, #tpu.memory_space<vmem>>, %arg4: memref<1x32xf32, #tpu.memory_space<vmem>>, %arg5: memref<32x96xf32, #tpu.memory_space<vmem>>, %arg6: memref<1x96xf32, #tpu.memory_space<vmem>>, %arg7: memref<32x32xf32, #tpu.memory_space<vmem>>, %arg8: memref<1x32xf32, #tpu.memory_space<vmem>>, %arg9: memref<1x32xf32, #tpu.memory_space<vmem>>, %arg10: memref<1x32xf32, #tpu.memory_space<vmem>>, %arg11: memref<32x64xf32, #tpu.memory_space<vmem>>, %arg12: memref<1x64xf32, #tpu.memory_space<vmem>>, %arg13: memref<64x32xf32, #tpu.memory_space<vmem>>, %arg14: memref<1x32xf32, #tpu.memory_space<vmem>>, %arg15: memref<16x32xf32, #tpu.memory_space<vmem>>, %arg16: memref<16x32xf32, #tpu.memory_space<vmem>>) attributes {dimension_semantics = [#tpu.dimension_semantics<arbitrary>], iteration_bounds = array<i64: 1>, scalar_prefetch = 0 : i64, scratch_operands = 1 : i64, tpu.core_type = #tpu.core_type<tc>, window_params = [{pipeline_mode = #tpu.pipeline_mode<synchronous>, transform_indices = @transform_0, window_bounds = array<i64: 16, 32>}, {pipeline_mode = #tpu.pipeline_mode<synchronous>, transform_indices = @transform_1, window_bounds = array<i64: 64, 16>}, {pipeline_mode = #tpu.pipeline_mode<synchronous>, transform_indices = @transform_2, window_bounds = array<i64: 1, 32>}, {pipeline_mode = #tpu.pipeline_mode<synchronous>, transform_indices = @transform_3, window_bounds = array<i64: 1, 32>}, {pipeline_mode = #tpu.pipeline_mode<synchronous>, transform_indices = @transform_4, window_bounds = array<i64: 32, 96>}, {pipeline_mode = #tpu.pipeline_mode<synchronous>, transform_indices = @transform_5, window_bounds = array<i64: 1, 96>}, {pipeline_mode = #tpu.pipeline_mode<synchronous>, transform_indices = @transform_6, window_bounds = array<i64: 32, 32>}, {pipeline_mode = #tpu.pipeline_mode<synchronous>, transform_indices = @transform_7, window_bounds = array<i64: 1, 32>}, {pipeline_mode = #tpu.pipeline_mode<synchronous>, transform_indices = @transform_8, window_bounds = array<i64: 1, 32>}, {pipeline_mode = #tpu.pipeline_mode<synchronous>, transform_indices = @transform_9, window_bounds = array<i64: 1, 32>}, {pipeline_mode = #tpu.pipeline_mode<synchronous>, transform_indices = @transform_10, window_bounds = array<i64: 32, 64>}, {pipeline_mode = #tpu.pipeline_mode<synchronous>, transform_indices = @transform_11, window_bounds = array<i64: 1, 64>}, {pipeline_mode = #tpu.pipeline_mode<synchronous>, transform_indices = @transform_12, window_bounds = array<i64: 64, 32>}, {pipeline_mode = #tpu.pipeline_mode<synchronous>, transform_indices = @transform_13, window_bounds = array<i64: 1, 32>}, {pipeline_mode = #tpu.pipeline_mode<synchronous>, transform_indices = @transform_14, window_bounds = array<i64: 16, 32>}]} {
    %c0 = arith.constant 0 : index
    %c0_0 = arith.constant 0 : index
    %0 = vector.load %arg1[%c0, %c0_0] : memref<16x32xf32, #tpu.memory_space<vmem>>, vector<16x32xf32>
    %c0_1 = arith.constant 0 : index
    %c0_2 = arith.constant 0 : index
    %1 = vector.load %arg3[%c0_1, %c0_2] : memref<1x32xf32, #tpu.memory_space<vmem>>, vector<1x32xf32>
    %2 = vector.shape_cast %1 : vector<1x32xf32> to vector<32xf32>
    %c0_3 = arith.constant 0 : index
    %c0_4 = arith.constant 0 : index
    %3 = vector.load %arg4[%c0_3, %c0_4] : memref<1x32xf32, #tpu.memory_space<vmem>>, vector<1x32xf32>
    %4 = vector.shape_cast %3 : vector<1x32xf32> to vector<32xf32>
    %cst = arith.constant dense<0.000000e+00> : vector<16xf32>
    %5 = vector.multi_reduction <add>, %0, %cst [1] : vector<16x32xf32> to vector<16xf32>
    %6 = vector.shape_cast %5 : vector<16xf32> to vector<16x1xf32>
    %cst_5 = arith.constant 3.200000e+01 : f32
    %7 = vector.broadcast %cst_5 : f32 to vector<16x1xf32>
    %8 = arith.divf %6, %7 : vector<16x1xf32>
    %9 = vector.broadcast %8 : vector<16x1xf32> to vector<16x32xf32>
    %10 = arith.subf %0, %9 : vector<16x32xf32>
    %11 = arith.mulf %10, %10 : vector<16x32xf32>
    %cst_6 = arith.constant dense<0.000000e+00> : vector<16xf32>
    %12 = vector.multi_reduction <add>, %11, %cst_6 [1] : vector<16x32xf32> to vector<16xf32>
    %13 = vector.shape_cast %12 : vector<16xf32> to vector<16x1xf32>
    %cst_7 = arith.constant 3.100000e+01 : f32
    %14 = vector.broadcast %cst_7 : f32 to vector<16x1xf32>
    %15 = arith.divf %13, %14 : vector<16x1xf32>
    %16 = vector.broadcast %8 : vector<16x1xf32> to vector<16x32xf32>
    %17 = arith.subf %0, %16 : vector<16x32xf32>
    %18 = vector.shape_cast %2 : vector<32xf32> to vector<1x32xf32>
    %19 = vector.broadcast %18 : vector<1x32xf32> to vector<16x32xf32>
    %20 = arith.mulf %19, %17 : vector<16x32xf32>
    %21 = math.sqrt %15 : vector<16x1xf32>
    %cst_8 = arith.constant 9.99999997E-7 : f32
    %22 = vector.broadcast %cst_8 : f32 to vector<16x1xf32>
    %23 = arith.addf %21, %22 : vector<16x1xf32>
    %24 = vector.broadcast %23 : vector<16x1xf32> to vector<16x32xf32>
    %25 = arith.divf %20, %24 : vector<16x32xf32>
    %26 = vector.shape_cast %4 : vector<32xf32> to vector<1x32xf32>
    %27 = vector.broadcast %26 : vector<1x32xf32> to vector<16x32xf32>
    %28 = arith.addf %25, %27 : vector<16x32xf32>
    %c0_9 = arith.constant 0 : index
    %c0_10 = arith.constant 0 : index
    %29 = vector.load %arg5[%c0_9, %c0_10] : memref<32x96xf32, #tpu.memory_space<vmem>>, vector<32x96xf32>
    %cst_11 = arith.constant dense<0.000000e+00> : vector<16x96xf32>
    %30 = tpu.matmul %28, %29, %cst_11 {dimension_numbers = #tpu.dot_dimension_numbers<[1], [0], [0], [1], [0, 0, 1, 1], [], []>} : vector<16x32xf32>, vector<32x96xf32>, vector<16x96xf32> -> vector<16x96xf32>
    %c0_12 = arith.constant 0 : index
    %c0_13 = arith.constant 0 : index
    %31 = vector.load %arg6[%c0_12, %c0_13] : memref<1x96xf32, #tpu.memory_space<vmem>>, vector<1x96xf32>
    %32 = vector.shape_cast %31 : vector<1x96xf32> to vector<96xf32>
    %33 = vector.shape_cast %32 : vector<96xf32> to vector<1x96xf32>
    %34 = vector.broadcast %33 : vector<1x96xf32> to vector<16x96xf32>
    %35 = arith.addf %30, %34 : vector<16x96xf32>
    %cst_14 = arith.constant 8.000000e+00 : f32
    %36 = math.sqrt %cst_14 : f32
    %cst_15 = arith.constant 1.000000e+00 : f32
    %37 = arith.divf %cst_15, %36 : f32
    %38 = vector.extract_strided_slice %35 {offsets = [0, 0], sizes = [16, 32], strides = [1, 1]} : vector<16x96xf32> to vector<16x32xf32>
    %39 = vector.broadcast %37 : f32 to vector<16x32xf32>
    %40 = arith.mulf %38, %39 : vector<16x32xf32>
    %41 = vector.extract_strided_slice %35 {offsets = [0, 32], sizes = [16, 32], strides = [1, 1]} : vector<16x96xf32> to vector<16x32xf32>
    %42 = vector.extract_strided_slice %35 {offsets = [0, 64], sizes = [16, 32], strides = [1, 1]} : vector<16x96xf32> to vector<16x32xf32>
    %43 = vector.extract_strided_slice %40 {offsets = [0, 0], sizes = [16, 8], strides = [1, 1]} : vector<16x32xf32> to vector<16x8xf32>
    %44 = vector.extract_strided_slice %41 {offsets = [0, 0], sizes = [16, 8], strides = [1, 1]} : vector<16x32xf32> to vector<16x8xf32>
    %cst_16 = arith.constant dense<0.000000e+00> : vector<16x16xf32>
    %45 = tpu.matmul %43, %44, %cst_16 {dimension_numbers = #tpu.dot_dimension_numbers<[1], [1], [0], [0], [0, 0, 1, 0], [], []>} : vector<16x8xf32>, vector<16x8xf32>, vector<16x16xf32> -> vector<16x16xf32>
    %46 = vector.extract_strided_slice %40 {offsets = [0, 8], sizes = [16, 8], strides = [1, 1]} : vector<16x32xf32> to vector<16x8xf32>
    %47 = vector.extract_strided_slice %41 {offsets = [0, 8], sizes = [16, 8], strides = [1, 1]} : vector<16x32xf32> to vector<16x8xf32>
    %cst_17 = arith.constant dense<0.000000e+00> : vector<16x16xf32>
    %48 = tpu.matmul %46, %47, %cst_17 {dimension_numbers = #tpu.dot_dimension_numbers<[1], [1], [0], [0], [0, 0, 1, 0], [], []>} : vector<16x8xf32>, vector<16x8xf32>, vector<16x16xf32> -> vector<16x16xf32>
    %49 = vector.extract_strided_slice %40 {offsets = [0, 16], sizes = [16, 8], strides = [1, 1]} : vector<16x32xf32> to vector<16x8xf32>
    %50 = vector.extract_strided_slice %41 {offsets = [0, 16], sizes = [16, 8], strides = [1, 1]} : vector<16x32xf32> to vector<16x8xf32>
    %cst_18 = arith.constant dense<0.000000e+00> : vector<16x16xf32>
    %51 = tpu.matmul %49, %50, %cst_18 {dimension_numbers = #tpu.dot_dimension_numbers<[1], [1], [0], [0], [0, 0, 1, 0], [], []>} : vector<16x8xf32>, vector<16x8xf32>, vector<16x16xf32> -> vector<16x16xf32>
    %52 = vector.extract_strided_slice %40 {offsets = [0, 24], sizes = [16, 8], strides = [1, 1]} : vector<16x32xf32> to vector<16x8xf32>
    %53 = vector.extract_strided_slice %41 {offsets = [0, 24], sizes = [16, 8], strides = [1, 1]} : vector<16x32xf32> to vector<16x8xf32>
    %cst_19 = arith.constant dense<0.000000e+00> : vector<16x16xf32>
    %54 = tpu.matmul %52, %53, %cst_19 {dimension_numbers = #tpu.dot_dimension_numbers<[1], [1], [0], [0], [0, 0, 1, 0], [], []>} : vector<16x8xf32>, vector<16x8xf32>, vector<16x16xf32> -> vector<16x16xf32>
    %55 = tpu.concatenate %45, %48, %51, %54 in 0 : vector<16x16xf32>, vector<16x16xf32>, vector<16x16xf32>, vector<16x16xf32> -> vector<64x16xf32>
    %c0_20 = arith.constant 0 : index
    %c0_21 = arith.constant 0 : index
    %56 = vector.load %arg2[%c0_20, %c0_21] : memref<64x16xf32, #tpu.memory_space<vmem>>, vector<64x16xf32>
    %57 = arith.addf %55, %56 : vector<64x16xf32>
    %cst_22 = arith.constant dense<0xFF800000> : vector<64xf32>
    %58 = vector.multi_reduction <maximumf>, %57, %cst_22 [1] : vector<64x16xf32> to vector<64xf32>
    %59 = vector.shape_cast %58 : vector<64xf32> to vector<64x1xf32>
    %60 = vector.broadcast %59 : vector<64x1xf32> to vector<64x16xf32>
    %61 = arith.subf %57, %60 : vector<64x16xf32>
    %62 = math.exp %61 : vector<64x16xf32>
    %cst_23 = arith.constant dense<0.000000e+00> : vector<64xf32>
    %63 = vector.multi_reduction <add>, %62, %cst_23 [1] : vector<64x16xf32> to vector<64xf32>
    %64 = vector.shape_cast %63 : vector<64xf32> to vector<64x1xf32>
    %65 = tpu.reciprocal %64 {approx = true} : vector<64x1xf32> -> vector<64x1xf32>
    %66 = vector.broadcast %65 : vector<64x1xf32> to vector<64x16xf32>
    %67 = arith.mulf %62, %66 : vector<64x16xf32>
    %68 = vector.extract_strided_slice %67 {offsets = [0, 0], sizes = [16, 16], strides = [1, 1]} : vector<64x16xf32> to vector<16x16xf32>
    %69 = vector.extract_strided_slice %42 {offsets = [0, 0], sizes = [16, 8], strides = [1, 1]} : vector<16x32xf32> to vector<16x8xf32>
    %cst_24 = arith.constant dense<0.000000e+00> : vector<16x8xf32>
    %70 = tpu.matmul %68, %69, %cst_24 {dimension_numbers = #tpu.dot_dimension_numbers<[1], [0], [0], [1], [0, 0, 1, 1], [], []>} : vector<16x16xf32>, vector<16x8xf32>, vector<16x8xf32> -> vector<16x8xf32>
    %c0_25 = arith.constant 0 : index
    %c0_26 = arith.constant 0 : index
    %71 = vector.load %arg16[%c0_25, %c0_26] : memref<16x32xf32, #tpu.memory_space<vmem>>, vector<16x8xf32>
    tpu.vector_store %arg16[%c0_25, %c0_26], %70 {strides = array<i32>} : memref<16x32xf32, #tpu.memory_space<vmem>>, vector<16x8xf32>,
    %72 = vector.extract_strided_slice %67 {offsets = [16, 0], sizes = [16, 16], strides = [1, 1]} : vector<64x16xf32> to vector<16x16xf32>
    %73 = vector.extract_strided_slice %42 {offsets = [0, 8], sizes = [16, 8], strides = [1, 1]} : vector<16x32xf32> to vector<16x8xf32>
    %cst_27 = arith.constant dense<0.000000e+00> : vector<16x8xf32>
    %74 = tpu.matmul %72, %73, %cst_27 {dimension_numbers = #tpu.dot_dimension_numbers<[1], [0], [0], [1], [0, 0, 1, 1], [], []>} : vector<16x16xf32>, vector<16x8xf32>, vector<16x8xf32> -> vector<16x8xf32>
    %c0_28 = arith.constant 0 : index
    %c8 = arith.constant 8 : index
    %75 = vector.load %arg16[%c0_28, %c8] : memref<16x32xf32, #tpu.memory_space<vmem>>, vector<16x8xf32>
    tpu.vector_store %arg16[%c0_28, %c8], %74 {strides = array<i32>} : memref<16x32xf32, #tpu.memory_space<vmem>>, vector<16x8xf32>,
    %76 = vector.extract_strided_slice %67 {offsets = [32, 0], sizes = [16, 16], strides = [1, 1]} : vector<64x16xf32> to vector<16x16xf32>
    %77 = vector.extract_strided_slice %42 {offsets = [0, 16], sizes = [16, 8], strides = [1, 1]} : vector<16x32xf32> to vector<16x8xf32>
    %cst_29 = arith.constant dense<0.000000e+00> : vector<16x8xf32>
    %78 = tpu.matmul %76, %77, %cst_29 {dimension_numbers = #tpu.dot_dimension_numbers<[1], [0], [0], [1], [0, 0, 1, 1], [], []>} : vector<16x16xf32>, vector<16x8xf32>, vector<16x8xf32> -> vector<16x8xf32>
    %c0_30 = arith.constant 0 : index
    %c16 = arith.constant 16 : index
    %79 = vector.load %arg16[%c0_30, %c16] : memref<16x32xf32, #tpu.memory_space<vmem>>, vector<16x8xf32>
    tpu.vector_store %arg16[%c0_30, %c16], %78 {strides = array<i32>} : memref<16x32xf32, #tpu.memory_space<vmem>>, vector<16x8xf32>,
    %80 = vector.extract_strided_slice %67 {offsets = [48, 0], sizes = [16, 16], strides = [1, 1]} : vector<64x16xf32> to vector<16x16xf32>
    %81 = vector.extract_strided_slice %42 {offsets = [0, 24], sizes = [16, 8], strides = [1, 1]} : vector<16x32xf32> to vector<16x8xf32>
    %cst_31 = arith.constant dense<0.000000e+00> : vector<16x8xf32>
    %82 = tpu.matmul %80, %81, %cst_31 {dimension_numbers = #tpu.dot_dimension_numbers<[1], [0], [0], [1], [0, 0, 1, 1], [], []>} : vector<16x16xf32>, vector<16x8xf32>, vector<16x8xf32> -> vector<16x8xf32>
    %c0_32 = arith.constant 0 : index
    %c24 = arith.constant 24 : index
    %83 = vector.load %arg16[%c0_32, %c24] : memref<16x32xf32, #tpu.memory_space<vmem>>, vector<16x8xf32>
    tpu.vector_store %arg16[%c0_32, %c24], %82 {strides = array<i32>} : memref<16x32xf32, #tpu.memory_space<vmem>>, vector<16x8xf32>,
    %c0_33 = arith.constant 0 : index
    %c0_34 = arith.constant 0 : index
    %84 = vector.load %arg16[%c0_33, %c0_34] : memref<16x32xf32, #tpu.memory_space<vmem>>, vector<16x32xf32>
    %c0_35 = arith.constant 0 : index
    %c0_36 = arith.constant 0 : index
    %85 = vector.load %arg7[%c0_35, %c0_36] : memref<32x32xf32, #tpu.memory_space<vmem>>, vector<32x32xf32>
    %cst_37 = arith.constant dense<0.000000e+00> : vector<16x32xf32>
    %86 = tpu.matmul %84, %85, %cst_37 {dimension_numbers = #tpu.dot_dimension_numbers<[1], [0], [0], [1], [0, 0, 1, 1], [], []>} : vector<16x32xf32>, vector<32x32xf32>, vector<16x32xf32> -> vector<16x32xf32>
    %c0_38 = arith.constant 0 : index
    %c0_39 = arith.constant 0 : index
    %87 = vector.load %arg8[%c0_38, %c0_39] : memref<1x32xf32, #tpu.memory_space<vmem>>, vector<1x32xf32>
    %88 = vector.shape_cast %87 : vector<1x32xf32> to vector<32xf32>
    %89 = vector.shape_cast %88 : vector<32xf32> to vector<1x32xf32>
    %90 = vector.broadcast %89 : vector<1x32xf32> to vector<16x32xf32>
    %91 = arith.addf %86, %90 : vector<16x32xf32>
    %92 = arith.addf %0, %91 : vector<16x32xf32>
    %c0_40 = arith.constant 0 : index
    %c0_41 = arith.constant 0 : index
    %93 = vector.load %arg9[%c0_40, %c0_41] : memref<1x32xf32, #tpu.memory_space<vmem>>, vector<1x32xf32>
    %94 = vector.shape_cast %93 : vector<1x32xf32> to vector<32xf32>
    %c0_42 = arith.constant 0 : index
    %c0_43 = arith.constant 0 : index
    %95 = vector.load %arg10[%c0_42, %c0_43] : memref<1x32xf32, #tpu.memory_space<vmem>>, vector<1x32xf32>
    %96 = vector.shape_cast %95 : vector<1x32xf32> to vector<32xf32>
    %cst_44 = arith.constant dense<0.000000e+00> : vector<16xf32>
    %97 = vector.multi_reduction <add>, %92, %cst_44 [1] : vector<16x32xf32> to vector<16xf32>
    %98 = vector.shape_cast %97 : vector<16xf32> to vector<16x1xf32>
    %cst_45 = arith.constant 3.200000e+01 : f32
    %99 = vector.broadcast %cst_45 : f32 to vector<16x1xf32>
    %100 = arith.divf %98, %99 : vector<16x1xf32>
    %101 = vector.broadcast %100 : vector<16x1xf32> to vector<16x32xf32>
    %102 = arith.subf %92, %101 : vector<16x32xf32>
    %103 = arith.mulf %102, %102 : vector<16x32xf32>
    %cst_46 = arith.constant dense<0.000000e+00> : vector<16xf32>
    %104 = vector.multi_reduction <add>, %103, %cst_46 [1] : vector<16x32xf32> to vector<16xf32>
    %105 = vector.shape_cast %104 : vector<16xf32> to vector<16x1xf32>
    %cst_47 = arith.constant 3.100000e+01 : f32
    %106 = vector.broadcast %cst_47 : f32 to vector<16x1xf32>
    %107 = arith.divf %105, %106 : vector<16x1xf32>
    %108 = vector.broadcast %100 : vector<16x1xf32> to vector<16x32xf32>
    %109 = arith.subf %92, %108 : vector<16x32xf32>
    %110 = vector.shape_cast %94 : vector<32xf32> to vector<1x32xf32>
    %111 = vector.broadcast %110 : vector<1x32xf32> to vector<16x32xf32>
    %112 = arith.mulf %111, %109 : vector<16x32xf32>
    %113 = math.sqrt %107 : vector<16x1xf32>
    %cst_48 = arith.constant 9.99999997E-7 : f32
    %114 = vector.broadcast %cst_48 : f32 to vector<16x1xf32>
    %115 = arith.addf %113, %114 : vector<16x1xf32>
    %116 = vector.broadcast %115 : vector<16x1xf32> to vector<16x32xf32>
    %117 = arith.divf %112, %116 : vector<16x32xf32>
    %118 = vector.shape_cast %96 : vector<32xf32> to vector<1x32xf32>
    %119 = vector.broadcast %118 : vector<1x32xf32> to vector<16x32xf32>
    %120 = arith.addf %117, %119 : vector<16x32xf32>
    %c0_49 = arith.constant 0 : index
    %c0_50 = arith.constant 0 : index
    %121 = vector.load %arg11[%c0_49, %c0_50] : memref<32x64xf32, #tpu.memory_space<vmem>>, vector<32x64xf32>
    %cst_51 = arith.constant dense<0.000000e+00> : vector<16x64xf32>
    %122 = tpu.matmul %120, %121, %cst_51 {dimension_numbers = #tpu.dot_dimension_numbers<[1], [0], [0], [1], [0, 0, 1, 1], [], []>} : vector<16x32xf32>, vector<32x64xf32>, vector<16x64xf32> -> vector<16x64xf32>
    %c0_52 = arith.constant 0 : index
    %c0_53 = arith.constant 0 : index
    %123 = vector.load %arg12[%c0_52, %c0_53] : memref<1x64xf32, #tpu.memory_space<vmem>>, vector<1x64xf32>
    %124 = vector.shape_cast %123 : vector<1x64xf32> to vector<64xf32>
    %125 = vector.shape_cast %124 : vector<64xf32> to vector<1x64xf32>
    %126 = vector.broadcast %125 : vector<1x64xf32> to vector<16x64xf32>
    %127 = arith.addf %122, %126 : vector<16x64xf32>
    %cst_54 = arith.constant 0.000000e+00 : f32
    %128 = vector.broadcast %cst_54 : f32 to vector<16x64xf32>
    %129 = arith.maximumf %127, %128 : vector<16x64xf32>
    %c0_55 = arith.constant 0 : index
    %c0_56 = arith.constant 0 : index
    %130 = vector.load %arg13[%c0_55, %c0_56] : memref<64x32xf32, #tpu.memory_space<vmem>>, vector<64x32xf32>
    %cst_57 = arith.constant dense<0.000000e+00> : vector<16x32xf32>
    %131 = tpu.matmul %129, %130, %cst_57 {dimension_numbers = #tpu.dot_dimension_numbers<[1], [0], [0], [1], [0, 0, 1, 1], [], []>} : vector<16x64xf32>, vector<64x32xf32>, vector<16x32xf32> -> vector<16x32xf32>
    %c0_58 = arith.constant 0 : index
    %c0_59 = arith.constant 0 : index
    %132 = vector.load %arg14[%c0_58, %c0_59] : memref<1x32xf32, #tpu.memory_space<vmem>>, vector<1x32xf32>
    %133 = vector.shape_cast %132 : vector<1x32xf32> to vector<32xf32>
    %134 = vector.shape_cast %133 : vector<32xf32> to vector<1x32xf32>
    %135 = vector.broadcast %134 : vector<1x32xf32> to vector<16x32xf32>
    %136 = arith.addf %131, %135 : vector<16x32xf32>
    %137 = arith.addf %92, %136 : vector<16x32xf32>
    %c0_60 = arith.constant 0 : index
    %c0_61 = arith.constant 0 : index
    %138 = vector.load %arg15[%c0_60, %c0_61] : memref<16x32xf32, #tpu.memory_space<vmem>>, vector<16x32xf32>
    tpu.vector_store %arg15[%c0_60, %c0_61], %137 {strides = array<i32>} : memref<16x32xf32, #tpu.memory_space<vmem>>, vector<16x32xf32>,
    return
  }
  func.func @transform_0(%arg0: i32) -> (i32, i32) {
    %c0_i32 = arith.constant 0 : i32
    %c0_i32_0 = arith.constant 0 : i32
    %c0_i32_1 = arith.constant 0 : i32
    return %c0_i32, %c0_i32_0 : i32, i32
  }
  func.func @transform_1(%arg0: i32) -> (i32, i32) {
    %c0_i32 = arith.constant 0 : i32
    %c0_i32_0 = arith.constant 0 : i32
    %c0_i32_1 = arith.constant 0 : i32
    return %c0_i32, %c0_i32_0 : i32, i32
  }
  func.func @transform_2(%arg0: i32) -> (i32, i32) {
    %c0_i32 = arith.constant 0 : i32
    %c0_i32_0 = arith.constant 0 : i32
    %c0_i32_1 = arith.constant 0 : i32
    return %c0_i32, %c0_i32_0 : i32, i32
  }
  func.func @transform_3(%arg0: i32) -> (i32, i32) {
    %c0_i32 = arith.constant 0 : i32
    %c0_i32_0 = arith.constant 0 : i32
    %c0_i32_1 = arith.constant 0 : i32
    return %c0_i32, %c0_i32_0 : i32, i32
  }
  func.func @transform_4(%arg0: i32) -> (i32, i32) {
    %c0_i32 = arith.constant 0 : i32
    %c0_i32_0 = arith.constant 0 : i32
    %c0_i32_1 = arith.constant 0 : i32
    return %c0_i32, %c0_i32_0 : i32, i32
  }
  func.func @transform_5(%arg0: i32) -> (i32, i32) {
    %c0_i32 = arith.constant 0 : i32
    %c0_i32_0 = arith.constant 0 : i32
    %c0_i32_1 = arith.constant 0 : i32
    return %c0_i32, %c0_i32_0 : i32, i32
  }
  func.func @transform_6(%arg0: i32) -> (i32, i32) {
    %c0_i32 = arith.constant 0 : i32
    %c0_i32_0 = arith.constant 0 : i32
    %c0_i32_1 = arith.constant 0 : i32
    return %c0_i32, %c0_i32_0 : i32, i32
  }
  func.func @transform_7(%arg0: i32) -> (i32, i32) {
    %c0_i32 = arith.constant 0 : i32
    %c0_i32_0 = arith.constant 0 : i32
    %c0_i32_1 = arith.constant 0 : i32
    return %c0_i32, %c0_i32_0 : i32, i32
  }
  func.func @transform_8(%arg0: i32) -> (i32, i32) {
    %c0_i32 = arith.constant 0 : i32
    %c0_i32_0 = arith.constant 0 : i32
    %c0_i32_1 = arith.constant 0 : i32
    return %c0_i32, %c0_i32_0 : i32, i32
  }
  func.func @transform_9(%arg0: i32) -> (i32, i32) {
    %c0_i32 = arith.constant 0 : i32
    %c0_i32_0 = arith.constant 0 : i32
    %c0_i32_1 = arith.constant 0 : i32
    return %c0_i32, %c0_i32_0 : i32, i32
  }
  func.func @transform_10(%arg0: i32) -> (i32, i32) {
    %c0_i32 = arith.constant 0 : i32
    %c0_i32_0 = arith.constant 0 : i32
    %c0_i32_1 = arith.constant 0 : i32
    return %c0_i32, %c0_i32_0 : i32, i32
  }
  func.func @transform_11(%arg0: i32) -> (i32, i32) {
    %c0_i32 = arith.constant 0 : i32
    %c0_i32_0 = arith.constant 0 : i32
    %c0_i32_1 = arith.constant 0 : i32
    return %c0_i32, %c0_i32_0 : i32, i32
  }
  func.func @transform_12(%arg0: i32) -> (i32, i32) {
    %c0_i32 = arith.constant 0 : i32
    %c0_i32_0 = arith.constant 0 : i32
    %c0_i32_1 = arith.constant 0 : i32
    return %c0_i32, %c0_i32_0 : i32, i32
  }
  func.func @transform_13(%arg0: i32) -> (i32, i32) {
    %c0_i32 = arith.constant 0 : i32
    %c0_i32_0 = arith.constant 0 : i32
    %c0_i32_1 = arith.constant 0 : i32
    return %c0_i32, %c0_i32_0 : i32, i32
  }
  func.func @transform_14(%arg0: i32) -> (i32, i32) {
    %c0_i32 = arith.constant 0 : i32
    %c0_i32_0 = arith.constant 0 : i32
    %c0_i32_1 = arith.constant 0 : i32
    return %c0_i32, %c0_i32_0 : i32, i32
  }
}

</mosaic_0001>

<bundles_post_ra>
// kernel: tpu_custom_call.1
= control target key start
LH: loop header
LB: loop body
LE: loop exit
PB: predicated region body
PF: predicated region fallthrough
CT: control target
= control target key end

     0   :  { %vm52_vm0 = vcmask 261120   ;;  %s2185_s0 = inlined_call_operand.vmem [shape: f32[16,32], index: 0, kind: input, shape index: {}]   ;;  %s2186_s1 = inlined_call_operand.vmem [shape: f32[64,16], index: 1, kind: input, shape index: {}]   ;;  %s2187_s2 = inlined_call_operand.vmem [shape: f32[1,32], index: 2, kind: input, shape index: {}]   ;;  %s2188_s3 = inlined_call_operand.vmem [shape: f32[1,32], index: 3, kind: input, shape index: {}]   ;;  %s2189_s4 = inlined_call_operand.vmem [shape: f32[32,96], index: 4, kind: input, shape index: {}]   ;;  %s2190_s5 = inlined_call_operand.vmem [shape: f32[1,96], index: 5, kind: input, shape index: {}]   ;;  %s2191_s6 = inlined_call_operand.vmem [shape: f32[32,32], index: 6, kind: input, shape index: {}]   ;;  %s2192_s7 = inlined_call_operand.vmem [shape: f32[1,32], index: 7, kind: input, shape index: {}]   ;;  %s2193_s8 = inlined_call_operand.vmem [shape: f32[1,32], index: 8, kind: input, shape index: {}]   ;;  %s2194_s9 = inlined_call_operand.vmem [shape: f32[1,32], index: 9, kind: input, shape index: {}]   ;;  %s2195_s10 = inlined_call_operand.vmem [shape: f32[32,64], index: 10, kind: input, shape index: {}]   ;;  %s2196_s11 = inlined_call_operand.vmem [shape: f32[1,64], index: 11, kind: input, shape index: {}]   ;;  %s2197_s12 = inlined_call_operand.vmem [shape: f32[64,32], index: 12, kind: input, shape index: {}]   ;;  %s2198_s13 = inlined_call_operand.vmem [shape: f32[1,32], index: 13, kind: input, shape index: {}]   ;;  %s2199_s14 = inlined_call_operand.hbm [shape: f32[16,32], index: 14, kind: output, shape index: {}]  }
   0x1   :  { %v1933_v0 = vld [vmem:[%s2185_s0] sm:$0xff]  ;;  %v1938_v1 = vld [vmem:[%s2185_s0 + $0x8] sm:$0xff] }
   0x2   :  { %v53_v2 = vsel %vm52_vm0, %v1933_v0, 0.0 }
   0x3   :  { %19 = vsyncpa [#allocation4], 0  ;;  %54 = vadd.xlane.f32.xlu0 %v53_v2  ;;  %v56_v3 = vsel %vm52_vm0, %v1938_v1, 0.0  ;;  %v111_v14 = vld [vmem:[%s2189_s4] sm:$0xff]  ;;  %v112_v15 = vld [vmem:[%s2189_s4 + $0x8] sm:$0xff]  ;;  %vm211_vm5 = vcmask 64512  }
   0x4   :  { %v113_v16 = vld [vmem:[%s2189_s4 + $0x10] sm:$0xff]  ;;  %v1631_v17 = vpack.c.bf16 %v112_v15, %v111_v14  ;;  %v114_v18 = vld [vmem:[%s2189_s4 + $0x18] sm:$0xff]  ;;  %v1423_v36 = vld [vmem:[%s2187_s2] ss:$0 sm:$0xff]  ;;  %s1839_s2 = smov 88   ;;  %s1841_s29 = smov 80  }
   0x5   :  { %v1635_v19 = vpack.c.bf16 %v114_v18, %v113_v16  ;;  %v1424_v39 = vld [vmem:[%s2188_s3] ss:$0 sm:$0xff]  ;;  %s1840_s3 = smov 96   ;;  %s1843_s30 = smov 72   ;;  %vm1980_vm6 = vmpackc.low %vm211_vm5, %vm211_vm5  ;;  %v571_v15 = vld [vmem:[%s2186_s1 + $0x8] sm:$0xff]  ;;  %vm586_vm7 = vcmask 130048  }
   0x6   :  { %1632 = vmatprep.subr.bf16.mxu1 %v1631_v17  ;;  %v1425_v46 = vld [vmem:[%s2190_s5] ss:$0 sm:$0xff]  ;;  %s1842_s5 = smov 120   ;;  %s1844_s15 = smov 112   ;;  %v573_v16 = vld [vmem:[%s2186_s1 + $0x18] sm:$0xff]  ;;  %vm859_vm8 = vcmask 130112  }
   0x7   :  { %57 = vadd.xlane.f32.xlu0 %v56_v3  ;;  %1634 = vmatpush3.bf16.msra.mxu1 %v1631_v17  ;;  %s1845_s16 = smov 104   ;;  %s1850_s22 = smov 8   ;;  %vm957_vm9 = vcmask 195712   ;;  %vm1055_vm10 = vcmask 261312   ;;  %vm1321_vm15 = vcmask 523264  }
   0x8   :  { %1636 = vmatprep.subr.bf16.mxu1 %v1635_v19  ;;  %s1851_s23 = smov 16  }
   0xb   :  { %1638 = vmatpush3.bf16.msra.mxu1 %v1635_v19 }
  0x90   :  { %v55_v4 = vpop.xlane.xlu0 %54 }
  0x91   :  { %v60_v5 = vmul.f32 0.03125, %v55_v4 }
  0x93   :  { %v62_v6 = vsub.f32 %v1933_v0, %v60_v5 }
  0x94   :  { %v58_v7 = vpop.xlane.xlu0 %57 }
  0x95   :  { %v61_v8 = vmul.f32 0.03125, %v58_v7  ;;  %v64_v9 = vmul.f32 %v62_v6, %v62_v6  ;;  %v81_v37 = vmul.f32 %v1423_v36, %v62_v6 }
  0x97   :  { %v63_v10 = vsub.f32 %v1938_v1, %v61_v8  ;;  %v66_v11 = vsel %vm52_vm0, %v64_v9, 0.0 }
  0x98   :  { %67 = vadd.xlane.f32.xlu1 %v66_v11 }
  0x99   :  { %v65_v12 = vmul.f32 %v63_v10, %v63_v10  ;;  %v82_v41 = vmul.f32 %v1423_v36, %v63_v10  ;;  %v574_v36 = vld [vmem:[%s2186_s1 + $0x20] sm:$0xff] }
  0x9b   :  { %v69_v13 = vsel %vm52_vm0, %v65_v12, 0.0 }
  0x9c   :  { %70 = vadd.xlane.f32.xlu1 %v69_v13 }
 0x125   :  { %v68_v20 = vpop.xlane.xlu1 %67 }
 0x126   :  { %v73_v21 = vmul.f32 0.032258064, %v68_v20 }
 0x128   :  { %1767 = vrsqrt.f32 %v73_v21  ;;  %vm85_vm1 = vcmp.eq.f32.partialorder %v73_v21, inf  ;;  %v88_v26 = vand.u32 2147483648, %v73_v21  ;;  %vm87_vm2 = vcmp.eq.f32.partialorder %v73_v21, 0.0 }
 0x129   :  { %v71_v22 = vpop.xlane.xlu1 %70 }
 0x12a   :  { %v74_v23 = vmul.f32 0.032258064, %v71_v22 }
 0x12c   :  { %1769 = vrsqrt.f32 %v74_v23  ;;  %vm92_vm3 = vcmp.eq.f32.partialorder %v74_v23, inf  ;;  %v95_v32 = vand.u32 2147483648, %v74_v23  ;;  %vm94_vm4 = vcmp.eq.f32.partialorder %v74_v23, 0.0 }
 0x132   :  { %v1768_v24 = vpop.eup %1767 }
 0x133   :  { %v84_v25 = vmul.f32 %v1768_v24, %v73_v21 }
 0x135   :  { %v86_v27 = vsel %vm85_vm1, %v73_v21, %v84_v25  ;;  %v570_v21 = vld [vmem:[%s2186_s1] sm:$0xff] }
 0x136   :  { %v1770_v28 = vpop.eup %1769  ;;  %v89_v29 = vsel %vm87_vm2, %v88_v26, %v86_v27  ;;  %v572_v27 = vld [vmem:[%s2186_s1 + $0x10] sm:$0xff] }
 0x137   :  { %v91_v30 = vmul.f32 %v1770_v28, %v74_v23  ;;  %v97_v31 = vadd.f32 1e-06, %v89_v29  ;;  %v575_v28 = vld [vmem:[%s2186_s1 + $0x28] sm:$0xff] }
 0x139   :  { %v93_v33 = vsel %vm92_vm3, %v74_v23, %v91_v30  ;;  %1771 = vrcp.f32 %v97_v31  ;;  %v577_v30 = vld [vmem:[%s2186_s1 + $0x38] sm:$0xff] }
 0x13a   :  { %v96_v34 = vsel %vm94_vm4, %v95_v32, %v93_v33 }
 0x13b   :  { %v98_v35 = vadd.f32 1e-06, %v96_v34 }
 0x13d   :  { %1773 = vrcp.f32 %v98_v35 }
 0x143   :  { %v1772_v38 = vpop.eup %1771 }
 0x144   :  { %v100_v40 = vmul.f32 %v1772_v38, %v81_v37 }
 0x146   :  { %v109_v42 = vadd.f32 %v1424_v39, %v100_v40 }
 0x147   :  { %v1774_v43 = vpop.eup %1773 }
 0x148   :  { %v102_v44 = vmul.f32 %v1774_v43, %v82_v41  ;;  %1531 = vmatprep.mubr.msk.f32.mxu1 %vm52_vm0, %v109_v42  ;;  %v576_v42 = vld [vmem:[%s2186_s1 + $0x30] sm:$0xff]  ;;  %s1846_s1 = smov 56  }
 0x14a   :  { %v110_v45 = vadd.f32 %v1424_v39, %v102_v44 }
 0x14c   :  { %1532 = vmatmul.mubr.msk.f32.vlgmr.msra.gmra.mrb[0].mxu1 %vm52_vm0, %v110_v45 }
 0x21f   :  { %v1533_v47 = vpop.f32.mrb[0].mxu1 }
 0x220   :  { %v200_v48 = vadd.f32 %v1533_v47, %v1425_v46  ;;  %v194_v49 = vpop.f32.mrb[1].mxu1 }
 0x221   :  { %v195_v50 = vadd.f32 %v1425_v46, %v194_v49 }
 0x222   :  { %v204_v53 = vmul.f32 0.35355338, %v200_v48 }
 0x223   :  { %v1971_v51 = vpack.i.bf16 %v200_v48, %v195_v50  ;;  %v203_v52 = vmul.f32 0.35355338, %v195_v50 }
 0x225   :  { %1733 = vrot.lane.b32.xlu1 %v1971_v51, %s1839_s2  ;;  %1728 = vrot.lane.b32.xlu0 %v1971_v51, %s1840_s3 }
 0x226   :  { %1538 = vmatprep.mubr.msk.f32.mxu1 %vm211_vm5, %v203_v52 }
 0x229   :  { %1738 = vrot.lane.b32.xlu1 %v1971_v51, %s1841_s29  ;;  %297 = vrot.lane.b32.xlu0 %v203_v52, %s1842_s5  ;;  %s1847_s29 = smov 48  }
 0x22d   :  { %1743 = vrot.lane.b32.xlu1 %v1971_v51, %s1843_s30  ;;  %388 = vrot.lane.b32.xlu0 %v203_v52, %s1844_s15  ;;  %s1849_s30 = smov 64  }
 0x231   :  { %299 = vrot.lane.b32.xlu1 %v204_v53, %s1842_s5  ;;  %479 = vrot.lane.b32.xlu0 %v203_v52, %s1845_s16  ;;  %s1848_s5 = smov 40  }
 0x235   :  { %390 = vrot.lane.b32.xlu1 %v204_v53, %s1844_s15 }
 0x239   :  { %481 = vrot.lane.b32.xlu1 %v204_v53, %s1845_s16 }
 0x297   :  { %v1734_v54 = vpop.permute.xlu1 %1733  ;;  %v1729_v55 = vpop.permute.xlu0 %1728 }
 0x298   :  { %v1736_v56 = vunpack.i.h.bf16 %v1734_v54  ;;  %v1735_v57 = vunpack.i.l.bf16 %v1734_v54  ;;  %v1731_v58 = vunpack.i.h.bf16 %v1729_v55  ;;  %v1730_v59 = vunpack.i.l.bf16 %v1729_v55 }
 0x29a   :  { %v1639_v61 = vpack.c.bf16 %v1731_v58, %v1730_v59  ;;  %v1645_v62 = vpack.c.bf16 %v1736_v56, %v1735_v57 }
 0x29b   :  { %v1739_v63 = vpop.permute.xlu1 %1738  ;;  %v298_v2 = vpop.permute.xlu0 %297 }
 0x29c   :  { %v1741_v3 = vunpack.i.h.bf16 %v1739_v63  ;;  %v1740_v4 = vunpack.i.l.bf16 %v1739_v63  ;;  %1641 = vmatprep.subr.msk.bf16.mxu1 %vm1980_vm6, %v1639_v61  ;;  %1647 = vmatprep.subr.msk.bf16.mxu0 %vm1980_vm6, %v1645_v62 }
 0x29d   :  { %1545 = vmatprep.mubr.msk.f32.mxu0 %vm211_vm5, %v298_v2  ;;  %1644 = vmatpush3.bf16.xpose.msk.msra.mxu1 %vm1980_vm6, %v1639_v61 }
 0x29e   :  { %v1651_v5 = vpack.c.bf16 %v1741_v3, %v1740_v4  ;;  %1650 = vmatpush3.bf16.xpose.msk.msra.mxu0 %vm1980_vm6, %v1645_v62 }
 0x29f   :  { %v1744_v6 = vpop.permute.xlu1 %1743  ;;  %v389_v7 = vpop.permute.xlu0 %388 }
 0x2a0   :  { %v1746_v8 = vunpack.i.h.bf16 %v1744_v6  ;;  %v1745_v9 = vunpack.i.l.bf16 %v1744_v6  ;;  %1653 = vmatprep.subr.msk.bf16.mxu1 %vm1980_vm6, %v1651_v5 }
 0x2a2   :  { %v1657_v10 = vpack.c.bf16 %v1746_v8, %v1745_v9 }
 0x2a3   :  { %v300_v11 = vpop.permute.xlu1 %299  ;;  %v480_v12 = vpop.permute.xlu0 %479 }
 0x2a4   :  { %1539 = vmatmul.mubr.msk.f32.vlgmr.msra.gmra.mrb[2].mxu1 %vm211_vm5, %v204_v53  ;;  %1659 = vmatprep.subr.msk.bf16.mxu0 %vm1980_vm6, %v1657_v10 }
 0x2a5   :  { %1546 = vmatmul.mubr.msk.f32.vlgmr.msra.gmra.mrb[0].mxu0 %vm211_vm5, %v300_v11  ;;  %1656 = vmatpush3.bf16.xpose.msk.msra.mxu1 %vm1980_vm6, %v1651_v5 }
 0x2a6   :  { %1552 = vmatprep.mubr.msk.f32.mxu1 %vm211_vm5, %v389_v7  ;;  %1662 = vmatpush3.bf16.xpose.msk.msra.mxu0 %vm1980_vm6, %v1657_v10 }
 0x2a7   :  { %1559 = vmatprep.mubr.msk.f32.mxu0 %vm211_vm5, %v480_v12  ;;  %v391_v13 = vpop.permute.xlu1 %390 }
 0x2ab   :  { %v482_v14 = vpop.permute.xlu1 %481 }
 0x2ac   :  { %1553 = vmatmul.mubr.msk.f32.vlgmr.msra.gmra.mrb[4].mxu1 %vm211_vm5, %v391_v13 }
 0x2ad   :  { %1560 = vmatmul.mubr.msk.f32.vlgmr.msra.gmra.mrb[2].mxu0 %vm211_vm5, %v482_v14 }
 0x377   :  { %v1540_v17 = vpop.f32.mrb[2].mxu1 }
 0x378   :  { %v579_v18 = vadd.f32 %v1540_v17, %v571_v15  ;;  %v1547_v19 = vpop.f32.mrb[0].mxu0  ;;  %v288_v20 = vpop.f32.mrb[3].mxu1 }
 0x379   :  { %v581_v22 = vadd.f32 %v1547_v19, %v573_v16  ;;  %v379_v23 = vpop.f32.mrb[1].mxu0  ;;  %v578_v25 = vadd.f32 %v570_v21, %v288_v20 }
 0x37a   :  { %v590_v24 = vsel %vm586_vm7, %v579_v18, -inf  ;;  %v580_v29 = vadd.f32 %v572_v27, %v379_v23 }
 0x37b   :  { %v596_v26 = vsel %vm586_vm7, %v581_v22, -inf  ;;  %591 = vmax.xlane.f32.xlu1 %v590_v24  ;;  %v587_v31 = vsel %vm586_vm7, %v578_v25, -inf }
 0x37c   :  { %597 = vmax.xlane.f32.xlu0 %v596_v26  ;;  %v593_v41 = vsel %vm586_vm7, %v580_v29, -inf }
 0x37f   :  { %v1554_v32 = vpop.f32.mrb[4].mxu1 }
 0x380   :  { %v1561_v33 = vpop.f32.mrb[2].mxu0  ;;  %588 = vmax.xlane.f32.xlu0 %v587_v31  ;;  %v583_v34 = vadd.f32 %v1554_v32, %v575_v28  ;;  %v470_v35 = vpop.f32.mrb[5].mxu1 }
 0x381   :  { %v561_v37 = vpop.f32.mrb[3].mxu0  ;;  %v585_v38 = vadd.f32 %v1561_v33, %v577_v30  ;;  %v582_v40 = vadd.f32 %v574_v36, %v470_v35 }
 0x382   :  { %v602_v39 = vsel %vm586_vm7, %v583_v34, -inf  ;;  %v584_v44 = vadd.f32 %v576_v42, %v561_v37 }
 0x383   :  { %603 = vmax.xlane.f32.xlu1 %v602_v39  ;;  %v608_v43 = vsel %vm586_vm7, %v585_v38, -inf  ;;  %v599_v45 = vsel %vm586_vm7, %v582_v40, -inf }
 0x384   :  { %594 = vmax.xlane.f32.xlu0 %v593_v41  ;;  %v605_v46 = vsel %vm586_vm7, %v584_v44, -inf }
 0x387   :  { %609 = vmax.xlane.f32.xlu1 %v608_v43 }
 0x388   :  { %600 = vmax.xlane.f32.xlu0 %v599_v45 }
 0x38c   :  { %606 = vmax.xlane.f32.xlu0 %v605_v46 }
 0x408   :  { %v592_v47 = vpop.xlane.xlu1 %591 }
 0x409   :  { %v598_v48 = vpop.xlane.xlu0 %597  ;;  %v612_v49 = vsub.f32 %v579_v18, %v592_v47 }
 0x40a   :  { %v614_v50 = vsub.f32 %v581_v22, %v598_v48 }
 0x40b   :  { %v621_v52 = vmul.f32 1.442695, %v612_v49 }
 0x40c   :  { %v625_v53 = vmul.f32 1.442695, %v614_v50 }
 0x40d   :  { %1775 = vpow2.f32 %v621_v52  ;;  %v589_v54 = vpop.xlane.xlu0 %588 }
 0x40e   :  { %v611_v55 = vsub.f32 %v578_v25, %v589_v54  ;;  %1777 = vpow2.f32 %v625_v53 }
 0x410   :  { %v619_v56 = vmul.f32 1.442695, %v611_v55  ;;  %v604_v57 = vpop.xlane.xlu1 %603 }
 0x411   :  { %v595_v58 = vpop.xlane.xlu0 %594  ;;  %v616_v59 = vsub.f32 %v583_v34, %v604_v57 }
 0x412   :  { %1779 = vpow2.f32 %v619_v56  ;;  %v613_v60 = vsub.f32 %v580_v29, %v595_v58 }
 0x413   :  { %v629_v61 = vmul.f32 1.442695, %v616_v59 }
 0x414   :  { %v623_v62 = vmul.f32 1.442695, %v613_v60  ;;  %v610_v63 = vpop.xlane.xlu1 %609 }
 0x415   :  { %1781 = vpow2.f32 %v629_v61  ;;  %v618_v2 = vsub.f32 %v585_v38, %v610_v63  ;;  %v601_v3 = vpop.xlane.xlu0 %600 }
 0x416   :  { %1783 = vpow2.f32 %v623_v62  ;;  %v615_v4 = vsub.f32 %v582_v40, %v601_v3 }
 0x417   :  { %v2039_v5 = vpop.eup %1775  ;;  %v633_v6 = vmul.f32 1.442695, %v618_v2 }
 0x418   :  { %v627_v7 = vmul.f32 1.442695, %v615_v4  ;;  %v638_v8 = vsel %vm586_vm7, %v2039_v5, 0.0  ;;  %v2043_v9 = vpop.eup %1777 }
 0x419   :  { %1785 = vpow2.f32 %v633_v6  ;;  %v607_v10 = vpop.xlane.xlu0 %606  ;;  %639 = vadd.xlane.f32.xlu1 %v638_v8  ;;  %v644_v14 = vsel %vm586_vm7, %v2043_v9, 0.0  ;;  %v1061_v8 = vld [vmem:[%s2191_s6 + $0x8] sm:$0xff] }
 0x41a   :  { %1787 = vpow2.f32 %v627_v7  ;;  %v617_v11 = vsub.f32 %v584_v44, %v607_v10  ;;  %v1060_v7 = vld [vmem:[%s2191_s6] sm:$0xff] }
 0x41b   :  { %v1679_v10 = vpack.c.bf16 %v1061_v8, %v1060_v7 }
 0x41c   :  { %v1780_v12 = vpop.eup %1779  ;;  %v631_v13 = vmul.f32 1.442695, %v617_v11  ;;  %v1062_v11 = vld [vmem:[%s2191_s6 + $0x10] sm:$0xff] }
 0x41d   :  { %645 = vadd.xlane.f32.xlu1 %v644_v14  ;;  %v635_v15 = vsel %vm586_vm7, %v1780_v12, 0.0 }
 0x41e   :  { %1789 = vpow2.f32 %v631_v13  ;;  %636 = vadd.xlane.f32.xlu0 %v635_v15 }
 0x41f   :  { %v2048_v16 = vpop.eup %1781 }
 0x420   :  { %v2050_v17 = vpop.eup %1783  ;;  %v650_v18 = vsel %vm586_vm7, %v2048_v16, 0.0 }
 0x421   :  { %651 = vadd.xlane.f32.xlu1 %v650_v18  ;;  %v641_v19 = vsel %vm586_vm7, %v2050_v17, 0.0 }
 0x422   :  { %642 = vadd.xlane.f32.xlu0 %v641_v19 }
 0x423   :  { %v2056_v20 = vpop.eup %1785 }
 0x424   :  { %v1788_v21 = vpop.eup %1787  ;;  %v656_v22 = vsel %vm586_vm7, %v2056_v20, 0.0 }
 0x425   :  { %657 = vadd.xlane.f32.xlu1 %v656_v22  ;;  %v647_v23 = vsel %vm586_vm7, %v1788_v21, 0.0 }
 0x426   :  { %648 = vadd.xlane.f32.xlu0 %v647_v23 }
 0x428   :  { %v2061_v24 = vpop.eup %1789 }
 0x429   :  { %v653_v25 = vsel %vm586_vm7, %v2061_v24, 0.0 }
 0x42a   :  { %654 = vadd.xlane.f32.xlu0 %v653_v25 }
 0x436   :  { %1753 = vrot.lane.b32.xlu1 %v1971_v51, %s1846_s1 }
 0x43a   :  { %1758 = vrot.lane.b32.xlu1 %v1971_v51, %s1847_s29 }
 0x43e   :  { %1763 = vrot.lane.b32.xlu1 %v1971_v51, %s1848_s5 }
 0x440   :  { %1748 = vrot.lane.b32.xlu0 %v1971_v51, %s1849_s30 }
 0x4a6   :  { %v640_v26 = vpop.xlane.xlu1 %639 }
 0x4aa   :  { %v646_v27 = vpop.xlane.xlu1 %645 }
 0x4ab   :  { %v637_v28 = vpop.xlane.xlu0 %636 }
 0x4ac   :  { %1791 = vrcp.f32 %v637_v28 }
 0x4ae   :  { %v652_v29 = vpop.xlane.xlu1 %651 }
 0x4af   :  { %v643_v30 = vpop.xlane.xlu0 %642  ;;  %1793 = vrcp.f32 %v652_v29 }
 0x4b2   :  { %v658_v31 = vpop.xlane.xlu1 %657 }
 0x4b3   :  { %v649_v32 = vpop.xlane.xlu0 %648 }
 0x4b4   :  { %1795 = vrcp.f32 %v649_v32 }
 0x4b5   :  { %1797 = vrcp.f32 %v640_v26  ;;  %v1452_v26 = vld [vmem:[%s2192_s7] ss:$0 sm:$0xff] }
 0x4b6   :  { %v1792_v33 = vpop.eup %1791  ;;  %1799 = vrcp.f32 %v643_v30  ;;  %v1754_v34 = vpop.permute.xlu1 %1753 }
 0x4b7   :  { %v655_v35 = vpop.xlane.xlu0 %654  ;;  %v667_v36 = vmul.f32 %v1792_v33, %v1780_v12  ;;  %1801 = vrcp.f32 %v646_v27  ;;  %v1756_v40 = vunpack.i.h.bf16 %v1754_v34  ;;  %v1755_v41 = vunpack.i.l.bf16 %v1754_v34  ;;  %v1063_v12 = vld [vmem:[%s2191_s6 + $0x18] sm:$0xff]  ;;  %s1852_s6 = smov 24  }
 0x4b8   :  { %1803 = vrcp.f32 %v655_v35  ;;  %v1683_v13 = vpack.c.bf16 %v1063_v12, %v1062_v11  ;;  %v1455_v12 = vld [vmem:[%s2193_s8] ss:$0 sm:$0xff] }
 0x4b9   :  { %1566 = vmatprep.mubr.msk.f32.mxu1 %vm586_vm7, %v667_v36  ;;  %v1794_v44 = vpop.eup %1793  ;;  %1805 = vrcp.f32 %v658_v31  ;;  %v1667_v53 = vpack.c.bf16 %v1756_v40, %v1755_v41 }
 0x4ba   :  { %v1759_v51 = vpop.permute.xlu1 %1758  ;;  %v672_v56 = vmul.f32 %v1794_v44, %v2048_v16  ;;  %v1214_v44 = vld [vmem:[%s2195_s10 + $0x10] sm:$0xff] }
 0x4bb   :  { %v1761_v37 = vunpack.i.h.bf16 %v1759_v51  ;;  %v1760_v38 = vunpack.i.l.bf16 %v1759_v51  ;;  %v1749_v39 = vpop.permute.xlu0 %1748 }
 0x4bc   :  { %v1751_v42 = vunpack.i.h.bf16 %v1749_v39  ;;  %v1750_v43 = vunpack.i.l.bf16 %v1749_v39 }
 0x4bd   :  { %v1671_v45 = vpack.c.bf16 %v1761_v37, %v1760_v38 }
 0x4be   :  { %v1796_v46 = vpop.eup %1795  ;;  %v1663_v47 = vpack.c.bf16 %v1751_v42, %v1750_v43  ;;  %v1764_v48 = vpop.permute.xlu1 %1763  ;;  %v1212_v42 = vld [vmem:[%s2195_s10] sm:$0xff]  ;;  %v1213_v43 = vld [vmem:[%s2195_s10 + $0x8] sm:$0xff] }
 0x4bf   :  { %v1798_v49 = vpop.eup %1797  ;;  %1672 = vmatprep.subr.bf16.mxu0 %v1671_v45  ;;  %v671_v50 = vmul.f32 %v1796_v46, %v1788_v21  ;;  %v1766_v54 = vunpack.i.h.bf16 %v1764_v48  ;;  %v1765_v55 = vunpack.i.l.bf16 %v1764_v48  ;;  %v1215_v46 = vld [vmem:[%s2195_s10 + $0x18] sm:$0xff]  ;;  %v1306_v48 = vld [vmem:[%s2197_s12] sm:$0xff] }
 0x4c0   :  { %v1800_v52 = vpop.eup %1799  ;;  %1664 = vmatprep.subr.bf16.mxu1 %v1663_v47  ;;  %1674 = vmatpush3.bf16.msra.mxu0 %v1671_v45  ;;  %v668_v57 = vmul.f32 %v1798_v49, %v2039_v5  ;;  %v1687_v45 = vpack.c.bf16 %v1213_v43, %v1212_v42  ;;  %v1307_v49 = vld [vmem:[%s2197_s12 + $0x8] sm:$0xff] }
 0x4c1   :  { %1666 = vmatpush3.bf16.msra.mxu1 %v1663_v47  ;;  %1580 = vmatprep.mubr.msk.f32.mxu0 %vm586_vm7, %v671_v50  ;;  %v1802_v58 = vpop.eup %1801  ;;  %v669_v59 = vmul.f32 %v1800_v52, %v2050_v17  ;;  %v1675_v61 = vpack.c.bf16 %v1766_v54, %v1765_v55  ;;  %v1691_v47 = vpack.c.bf16 %v1215_v46, %v1214_v44  ;;  %v1308_v50 = vld [vmem:[%s2197_s12 + $0x10] sm:$0xff]  ;;  %v1310_v55 = vld [vmem:[%s2197_s12 + $0x20] sm:$0xff] }
 0x4c2   :  { %1668 = vmatprep.subr.bf16.mxu1 %v1667_v53  ;;  %v1804_v60 = vpop.eup %1803  ;;  %v670_v62 = vmul.f32 %v1802_v58, %v2043_v9  ;;  %1680 = vmatprep.subr.bf16.mxu0 %v1679_v10  ;;  %v1695_v52 = vpack.c.bf16 %v1307_v49, %v1306_v48 }
 0x4c3   :  { %1581 = vmatmul.mubr.msk.f32.vlgmr.msra.gmra.mrb[4].mxu0 %vm586_vm7, %v672_v56  ;;  %v1806_v63 = vpop.eup %1805  ;;  %v673_v2 = vmul.f32 %v1804_v60, %v2061_v24  ;;  %v1311_v56 = vld [vmem:[%s2197_s12 + $0x28] sm:$0xff] }
 0x4c4   :  { %1567 = vmatmul.mubr.msk.f32.vlgmr.msra.gmra.mrb[6].mxu1 %vm586_vm7, %v668_v57  ;;  %v674_v3 = vmul.f32 %v1806_v63, %v2056_v20  ;;  %1682 = vmatpush3.bf16.msra.mxu0 %v1679_v10  ;;  %v1703_v57 = vpack.c.bf16 %v1311_v56, %v1310_v55 }
 0x4c5   :  { %1670 = vmatpush3.bf16.msra.mxu1 %v1667_v53  ;;  %1573 = vmatprep.mubr.msk.f32.mxu1 %vm586_vm7, %v669_v59  ;;  %v1309_v53 = vld [vmem:[%s2197_s12 + $0x18] sm:$0xff] }
 0x4c6   :  { %1676 = vmatprep.subr.bf16.mxu1 %v1675_v61  ;;  %1684 = vmatprep.subr.bf16.mxu0 %v1683_v13  ;;  %v1699_v54 = vpack.c.bf16 %v1309_v53, %v1308_v50 }
 0x4c8   :  { %1574 = vmatmul.mubr.msk.f32.vlgmr.msra.gmra.mrb[8].mxu1 %vm586_vm7, %v670_v62  ;;  %1686 = vmatpush3.bf16.msra.mxu0 %v1683_v13 }
 0x4c9   :  { %1678 = vmatpush3.bf16.msra.mxu1 %v1675_v61  ;;  %1587 = vmatprep.mubr.msk.f32.mxu1 %vm586_vm7, %v673_v2 }
 0x4ca   :  { %1688 = vmatprep.subr.bf16.mxu1 %v1687_v45  ;;  %1696 = vmatprep.subr.bf16.mxu0 %v1695_v52 }
 0x4cc   :  { %1588 = vmatmul.mubr.msk.f32.vlgmr.msra.gmra.mrb[10].mxu1 %vm586_vm7, %v674_v3 }
 0x4cd   :  { %1690 = vmatpush3.bf16.msra.mxu1 %v1687_v45 }
 0x4ce   :  { %1692 = vmatprep.subr.bf16.mxu1 %v1691_v47 }
 0x4d1   :  { %1694 = vmatpush3.bf16.msra.mxu1 %v1691_v47 }
 0x596   :  { %v1582_v4 = vpop.f32.mrb[4].mxu0 }
 0x597   :  { %v1568_v5 = vpop.f32.mrb[6].mxu1  ;;  %v940_v6 = vpop.f32.mrb[5].mxu0 }
 0x598   :  { %763 = vst.msk [vmem:[#allocation2 + $0x8] sm:$0xff] %vm211_vm5, %v1568_v5  ;;  %v753_v9 = vpop.f32.mrb[7].mxu1 }
 0x599   :  { %762 = vst.msk [vmem:[#allocation2] sm:$0xff] %vm211_vm5, %v753_v9 }
 0x59b   :  { %v1575_v14 = vpop.f32.mrb[8].mxu1 }
 0x59c   :  { %855 = vrot.lane.b32.xlu1 %v1575_v14, %s1850_s22  ;;  %v842_v15 = vpop.f32.mrb[9].mxu1 }
 0x59d   :  { %853 = vrot.lane.b32.xlu0 %v842_v15, %s1850_s22  ;;  %v1456_v15 = vld [vmem:[%s2194_s9] ss:$0 sm:$0xff] }
 0x59f   :  { %v1589_v16 = vpop.f32.mrb[10].mxu1 }
 0x5a0   :  { %953 = vrot.lane.b32.xlu1 %v1582_v4, %s1851_s23  ;;  %v1038_v17 = vpop.f32.mrb[11].mxu1 }
 0x5a1   :  { %951 = vrot.lane.b32.xlu0 %v940_v6, %s1851_s23 }
 0x5a4   :  { %1051 = vrot.lane.b32.xlu1 %v1589_v16, %s1852_s6 }
 0x5a5   :  { %1049 = vrot.lane.b32.xlu0 %v1038_v17, %s1852_s6 }
 0x60e   :  { %v856_v18 = vpop.permute.xlu1 %855 }
 0x60f   :  { %861 = vst.msk [vmem:[#allocation2 + $0x8] sm:$0xff] %vm859_vm8, %v856_v18  ;;  %v854_v19 = vpop.permute.xlu0 %853 }
 0x610   :  { %860 = vst.msk [vmem:[#allocation2] sm:$0xff] %vm859_vm8, %v854_v19 }
 0x612   :  { %v954_v20 = vpop.permute.xlu1 %953 }
 0x613   :  { %959 = vst.msk [vmem:[#allocation2 + $0x8] sm:$0xff] %vm957_vm9, %v954_v20  ;;  %v952_v21 = vpop.permute.xlu0 %951 }
 0x614   :  { %958 = vst.msk [vmem:[#allocation2] sm:$0xff] %vm957_vm9, %v952_v21 }
 0x616   :  { %v1052_v22 = vpop.permute.xlu1 %1051 }
 0x617   :  { %1057 = vst.msk [vmem:[#allocation2 + $0x8] sm:$0xff] %vm1055_vm10, %v1052_v22  ;;  %v1050_v23 = vpop.permute.xlu0 %1049  ;;  %v1312_v22 = vld [vmem:[%s2197_s12 + $0x30] sm:$0xff] }
 0x618   :  { %1056 = vst.msk [vmem:[#allocation2] sm:$0xff] %vm1055_vm10, %v1050_v23  ;;  %v1313_v23 = vld [vmem:[%s2197_s12 + $0x38] sm:$0xff]  ;;  %s1853_s12 = smov [#allocation3]  }
 0x619   :  { %s1412_s3 = sshll.u32 %s1853_s12, 4  ;;  %s1413_s3 = int_to_ptr.vmem [resolvable:$true] %s1412_s3 }
 0x61a   :  { %p1820_p1 = scmp.lt.s32.totalorder %s1413_s3, %s1413_s3 }
 0x61e   :  { %v1059_v25 = vld [vmem:[#allocation2 + $0x8] sm:$0xff] }
 0x61f   :  { %v1058_v24 = vld [vmem:[#allocation2] sm:$0xff] }
 0x620   :  { %1598 = vmatprep.mubr.msk.f32.mxu0 %vm52_vm0, %v1058_v24  ;;  %v1707_v24 = vpack.c.bf16 %v1313_v23, %v1312_v22 }
 0x621   :  { %1599 = vmatmul.mubr.msk.f32.vlgmr.msra.gmra.mrb[6].mxu0 %vm52_vm0, %v1059_v25  ;;  %v1457_v25 = vld [vmem:[%s2196_s11] ss:$0 sm:$0xff]  ;;  %s1815_s11 = scalar_lea.vmem %s1413_s3, 256 }
 0x622   :  { %1698 = vmatpush3.bf16.msra.mxu0 %v1695_v52  ;;  %p1816_p0 = scmp.ne.s32.totalorder %s1413_s3, %s1815_s11  ;;  %p1821_p2 = scmp.lt.s32.totalorder %s1815_s11, %s1815_s11 }
 0x623   :  { %1700 = vmatprep.subr.bf16.mxu0 %v1699_v54 }
 0x624   :  { %p1822_p3 = por %p1821_p2, %p1820_p1 }
 0x626   :  { %1702 = vmatpush3.bf16.msra.mxu0 %v1699_v54  ;;  %p1823_p4 = pnand %p1822_p3, %p1816_p0 }
 0x627   :  { %1704 = vmatprep.subr.bf16.mxu0 %v1703_v57 }
 0x62a   :  { %1706 = vmatpush3.bf16.msra.mxu0 %v1703_v57 }
 0x62b   :  { %1708 = vmatprep.subr.bf16.mxu0 %v1707_v24 }
 0x62e   :  { %1710 = vmatpush3.bf16.msra.mxu0 %v1707_v24 }
 0x6f4   :  { %v1600_v27 = vpop.f32.mrb[6].mxu0 }
 0x6f5   :  { %v1149_v28 = vadd.f32 %v1600_v27, %v1452_v26  ;;  %v1143_v29 = vpop.f32.mrb[7].mxu0 }
 0x6f6   :  { %v1144_v30 = vadd.f32 %v1452_v26, %v1143_v29 }
 0x6f7   :  { %v2105_v31 = vadd.f32 %v1149_v28, %v1938_v1 }
 0x6f8   :  { %v2108_v32 = vadd.f32 %v1144_v30, %v1933_v0 }
 0x6f9   :  { %v1159_v33 = vsel %vm52_vm0, %v2105_v31, 0.0 }
 0x6fa   :  { %1160 = vadd.xlane.f32.xlu1 %v1159_v33  ;;  %v1156_v34 = vsel %vm52_vm0, %v2108_v32, 0.0 }
 0x6fb   :  { %1157 = vadd.xlane.f32.xlu0 %v1156_v34  ;;  %v1460_v34 = vld [vmem:[%s2198_s13] ss:$0 sm:$0xff] }
 0x787   :  { %v1161_v35 = vpop.xlane.xlu1 %1160 }
 0x788   :  { %v1163_v36 = vmul.f32 0.03125, %v1161_v35  ;;  %v1158_v51 = vpop.xlane.xlu0 %1157 }
 0x789   :  { %v1162_v37 = vmul.f32 0.03125, %v1158_v51 }
 0x78a   :  { %v1165_v38 = vsub.f32 %v2105_v31, %v1163_v36 }
 0x78b   :  { %v1164_v1 = vsub.f32 %v2108_v32, %v1162_v37 }
 0x78c   :  { %v1167_v40 = vmul.f32 %v1165_v38, %v1165_v38  ;;  %v1183_v17 = vmul.f32 %v1455_v12, %v1165_v38 }
 0x78d   :  { %v1166_v39 = vmul.f32 %v1164_v1, %v1164_v1  ;;  %v1182_v13 = vmul.f32 %v1455_v12, %v1164_v1 }
 0x78e   :  { %v1171_v41 = vsel %vm52_vm0, %v1167_v40, 0.0 }
 0x78f   :  { %v1168_v0 = vsel %vm52_vm0, %v1166_v39, 0.0 }
 0x790   :  { %1169 = vadd.xlane.f32.xlu0 %v1168_v0 }
 0x794   :  { %1172 = vadd.xlane.f32.xlu0 %v1171_v41 }
 0x81d   :  { %v1170_v58 = vpop.xlane.xlu0 %1169 }
 0x81e   :  { %v1174_v59 = vmul.f32 0.032258064, %v1170_v58 }
 0x820   :  { %1807 = vrsqrt.f32 %v1174_v59  ;;  %vm1186_vm11 = vcmp.eq.f32.partialorder %v1174_v59, inf  ;;  %v1189_v2 = vand.u32 2147483648, %v1174_v59  ;;  %vm1188_vm12 = vcmp.eq.f32.partialorder %v1174_v59, 0.0 }
 0x821   :  { %v1173_v60 = vpop.xlane.xlu0 %1172 }
 0x822   :  { %v1175_v61 = vmul.f32 0.032258064, %v1173_v60 }
 0x824   :  { %1809 = vrsqrt.f32 %v1175_v61  ;;  %vm1193_vm13 = vcmp.eq.f32.partialorder %v1175_v61, inf  ;;  %v1196_v8 = vand.u32 2147483648, %v1175_v61  ;;  %vm1195_vm14 = vcmp.eq.f32.partialorder %v1175_v61, 0.0 }
 0x82a   :  { %v1808_v62 = vpop.eup %1807 }
 0x82b   :  { %v1185_v63 = vmul.f32 %v1808_v62, %v1174_v59 }
 0x82d   :  { %v1187_v3 = vsel %vm1186_vm11, %v1174_v59, %v1185_v63 }
 0x82e   :  { %v1810_v4 = vpop.eup %1809  ;;  %v1190_v5 = vsel %vm1188_vm12, %v1189_v2, %v1187_v3 }
 0x82f   :  { %v1192_v6 = vmul.f32 %v1810_v4, %v1175_v61  ;;  %v1198_v7 = vadd.f32 1e-06, %v1190_v5 }
 0x831   :  { %v1194_v9 = vsel %vm1193_vm13, %v1175_v61, %v1192_v6  ;;  %1811 = vrcp.f32 %v1198_v7 }
 0x832   :  { %v1197_v10 = vsel %vm1195_vm14, %v1196_v8, %v1194_v9 }
 0x833   :  { %v1199_v11 = vadd.f32 1e-06, %v1197_v10 }
 0x835   :  { %1813 = vrcp.f32 %v1199_v11 }
 0x83b   :  { %v1812_v14 = vpop.eup %1811 }
 0x83c   :  { %v1201_v16 = vmul.f32 %v1812_v14, %v1182_v13 }
 0x83e   :  { %v1210_v18 = vadd.f32 %v1456_v15, %v1201_v16 }
 0x83f   :  { %v1814_v19 = vpop.eup %1813 }
 0x840   :  { %v1203_v20 = vmul.f32 %v1814_v19, %v1183_v17  ;;  %1609 = vmatprep.mubr.msk.f32.mxu1 %vm52_vm0, %v1210_v18 }
 0x842   :  { %v1211_v21 = vadd.f32 %v1456_v15, %v1203_v20 }
 0x844   :  { %1610 = vmatmul.mubr.msk.f32.vlgmr.msra.gmra.mrb[12].mxu1 %vm52_vm0, %v1211_v21 }
 0x917   :  { %v1611_v26 = vpop.f32.mrb[12].mxu1 }
 0x918   :  { %v1301_v27 = vadd.f32 %v1611_v26, %v1457_v25  ;;  %v1295_v28 = vpop.f32.mrb[13].mxu1 }
 0x919   :  { %v1296_v29 = vadd.f32 %v1457_v25, %v1295_v28 }
 0x91a   :  { %v1305_v33 = vmax.f32 %v1301_v27, 0.0 }
 0x91b   :  { %v1304_v30 = vmax.f32 %v1296_v29, 0.0 }
 0x91d   :  { %1628 = vmatprep.mubr.msk.f32.mxu0 %vm1321_vm15, %v1304_v30 }
 0x91e   :  { %1629 = vmatmul.mubr.msk.f32.vlgmr.msra.gmra.mrb[8].mxu0 %vm1321_vm15, %v1305_v33 }
 0x9f1   :  { %v1630_v35 = vpop.f32.mrb[8].mxu0 }
 0x9f2   :  { %v1400_v36 = vadd.f32 %v1630_v35, %v1460_v34  ;;  %v1394_v51 = vpop.f32.mrb[9].mxu0 }
 0x9f3   :  { %v1395_v37 = vadd.f32 %v1460_v34, %v1394_v51 }
 0x9f4   :  { %v1404_v38 = vadd.f32 %v1400_v36, %v2105_v31 }
 0x9f5   :  { %v1403_v1 = vadd.f32 %v1395_v37, %v2108_v32 }
 0x9f6   :  { %1406 = vst.msk [vmem:[#allocation3 + $0x8] sm:$0xff] %vm52_vm0, %v1404_v38 }
 0x9f7   :  { %1405 = vst.msk [vmem:[#allocation3] sm:$0xff] %vm52_vm0, %v1403_v1 }
 0x9f8   :  { %1826 = shalt.err (!%p1823_p4)
}
 0x9f9   :  { %s1827_s29 = scalar_lea.hbm %s2199_s14, 256 }
 0x9fa   :  { %p1828_p5 = scmp.ne.s32.totalorder %s2199_s14, %s1827_s29  ;;  %p1831_p6 = scmp.lt.u32.totalorder %s1827_s29, %s2199_s14 }
 0x9fc   :  { %p1833_p7 = pnand %p1831_p6, %p1828_p5 }
 0x9fe   :  { %1836 = shalt.err (!%p1833_p7)
}
 0x9ff   :  { %s1854_s0 = smov 128  }
 0xa00   :  { %1418 = dma.vmem_to_hbm [thread:$0]  %s1413_s3, 256, %s2199_s14, [#allocation4], %s1854_s0, %s1854_s0, %s1850_s22  }
 0xa01   :  { %1837 = dma.done.wait [#allocation4], 256  }
 0xa02   :  { %1838 = vsyncadd [#allocation4], 4294967040 }
 0xa03   :  { %1422 = vsyncpa [#allocation4], 1 }

</bundles_post_ra>
